<compile_context>
chip_gen: v5e
topology: v5e:2x2
jax: 0.10.0
libtpu: 0.0.40
codegen_flags: <defaults>
</compile_context>

<pallas_src>
import functools

import jax
import jax.numpy as jnp
from jax import lax
from jax.experimental import pallas as pl
from jax.experimental.pallas import tpu as pltpu


def autopad(k, p=None):
    if p is None:
        p = k // 2 if isinstance(k, int) else [x // 2 for x in k]
    return p


def _round_up(x, m):
    return (x + m - 1) // m * m


def _conv_bn_silu_kernel(x_ref, w_ref, shift_ref, o_ref, *, k, dilation,
                         row_stride):
    """Fused dilated-conv + folded BatchNorm(eval) + SiLU for one image.

    x_ref    : (C1, FLAT)     bf16  flattened, spatially padded input image
    w_ref    : (k*k, C2, C1)  bf16  per-tap conv weight, BN scale folded in
    shift_ref: (C2, 1)        f32   beta - running_mean * scale
    o_ref    : (C2, L)        f32   lane-dense output block (L % 128 == 0)

    Output position (i, j) sits at flat lane i*row_stride + j; the dilated tap
    (kh, kw) is the contiguous lane window starting at
    kh*dilation*row_stride + kw*dilation.  Lanes with j >= W_out are junk and
    are cropped by the wrapper.
    """
    c2, L = o_ref.shape
    acc = jnp.zeros((c2, L), dtype=jnp.float32)
    for kh in range(k):                                   # static k*k unroll
        for kw in range(k):
            off = kh * dilation * row_stride + kw * dilation   # static int
            tap = x_ref[:, off:off + L]                   # (C1, L) bf16, contiguous
            acc = acc + jnp.dot(w_ref[kh * k + kw], tap,  # bf16 MXU, f32 accum
                                preferred_element_type=jnp.float32)
    y = acc + shift_ref[...]                              # folded BN (eval), f32
    y = y * jax.nn.sigmoid(y)                             # SiLU (exp -> EUP slot)
    o_ref[...] = y.astype(o_ref.dtype)                    # full unmasked store


def dilated_conv_bn_silu(x_nchw, weight_oihw, gamma, beta, run_mean, run_var,
                         *, k, stride, pad, dilation, eps=1e-5):
    """Fused Conv2d(dilation, groups=1, bias=False) + BatchNorm2d(eval) + SiLU."""
    assert stride == 1, "kernel supports stride=1 (the module default)"
    N, C1, H, W = x_nchw.shape
    C2 = weight_oihw.shape[0]
    eff_k = dilation * (k - 1) + 1
    H_out = H + 2 * pad - eff_k + 1
    W_out = W + 2 * pad - eff_k + 1
    H_p = H + 2 * pad
    W_p = W + 2 * pad

    # Lane-dense accumulator/output length: covers H_out rows at padded width,
    # rounded up to a multiple of 128 so every output store is unmasked.
    L = _round_up(H_out * W_p, 128)
    off_max = (k - 1) * dilation * W_p + (k - 1) * dilation
    FLAT = off_max + L          # flat input length so every tap window fits

    # ---- wrapper-side layout plumbing (tiny, one-off XLA ops) ----
    # bf16 activations/weights feed the MXU natively; accumulation stays f32.
    x_p = jnp.pad(x_nchw.astype(jnp.bfloat16),
                  ((0, 0), (0, 0), (pad, pad), (pad, pad)))
    x_flat = x_p.reshape(N, C1, H_p * W_p)
    x_flat = jnp.pad(x_flat, ((0, 0), (0, 0), (0, FLAT - H_p * W_p)))

    inv_std = (gamma.astype(jnp.float32)
               / jnp.sqrt(run_var.astype(jnp.float32) + eps))
    shift = (beta.astype(jnp.float32)
             - run_mean.astype(jnp.float32) * inv_std).reshape(C2, 1)
    # Fold the per-output-channel BN scale into the (load-once) conv weight.
    w_scaled = weight_oihw.astype(jnp.float32) * inv_std[:, None, None, None]
    # (C2, C1, k, k) -> (k*k, C2, C1): one (C2, C1) matrix per dilated tap.
    w_taps = jnp.transpose(w_scaled, (2, 3, 0, 1)).reshape(k * k, C2, C1)
    w_taps = w_taps.astype(jnp.bfloat16)

    kernel = functools.partial(_conv_bn_silu_kernel,
                               k=k, dilation=dilation, row_stride=W_p)

    out3d = pl.pallas_call(
        kernel,
        out_shape=jax.ShapeDtypeStruct((N, C2, L), jnp.float32),
        grid_spec=pltpu.PrefetchScalarGridSpec(
            num_scalar_prefetch=0,
            grid=(N,),
            in_specs=[
                pl.BlockSpec((pl.Squeezed(), C1, FLAT), lambda n: (n, 0, 0)),
                pl.BlockSpec((k * k, C2, C1), lambda n: (0, 0, 0)),
                pl.BlockSpec((C2, 1), lambda n: (0, 0)),
            ],
            out_specs=pl.BlockSpec((pl.Squeezed(), C2, L), lambda n: (n, 0, 0)),
        ),
        compiler_params=pltpu.CompilerParams(
            dimension_semantics=("parallel",)),
    )(x_flat, w_taps, shift)

    # Crop the width-pad ghost columns and reshape straight back to NCHW.
    out = out3d[:, :, :H_out * W_p].reshape(N, C2, H_out, W_p)[:, :, :, :W_out]
    return out


def reference_nchw(x, w, gamma, beta, mean, var, *, pad, dilation, eps=1e-5):
    y = lax.conv_general_dilated(
        x, w, window_strides=(1, 1),
        padding=((pad, pad), (pad, pad)),
        rhs_dilation=(dilation, dilation),
        dimension_numbers=("NCHW", "OIHW", "NCHW"),
        precision=jax.lax.Precision.HIGHEST)
    s = gamma / jnp.sqrt(var + eps)
    y = y * s[None, :, None, None] + (beta - mean * s)[None, :, None, None]
    return y * jax.nn.sigmoid(y)


if __name__ == "__main__":
    # DilatedConv(c1=4, c2=8, k=3, s=1, p=autopad(3)=1, g=1, act=True, dilation=2)
    N, C1, C2, H, W = 2, 4, 8, 16, 16
    K, STRIDE, DIL = 3, 1, 2
    PAD = autopad(K)   # = 1 (autopad ignores dilation — intentional, matches PyTorch)

    key = jax.random.PRNGKey(0)
    kx, kw, kg, kb, km, kv = jax.random.split(key, 6)

    x = jax.random.normal(kx, (N, C1, H, W), dtype=jnp.float32)
    conv_w = 0.1 * jax.random.normal(kw, (C2, C1, K, K), dtype=jnp.float32)
    bn_gamma = 1.0 + 0.1 * jax.random.normal(kg, (C2,), dtype=jnp.float32)
    bn_beta = 0.1 * jax.random.normal(kb, (C2,), dtype=jnp.float32)
    bn_mean = 0.05 * jax.random.normal(km, (C2,), dtype=jnp.float32)
    bn_var = 1.0 + 0.1 * jax.nn.softplus(jax.random.normal(kv, (C2,), dtype=jnp.float32))

    out = dilated_conv_bn_silu(
        x, conv_w, bn_gamma, bn_beta, bn_mean, bn_var,
        k=K, stride=STRIDE, pad=PAD, dilation=DIL)
    out = jax.block_until_ready(out)

    ref = reference_nchw(x, conv_w, bn_gamma, bn_beta, bn_mean, bn_var,
                         pad=PAD, dilation=DIL)
    assert out.shape == ref.shape == (N, C2, H - 2, W - 2), (out.shape, ref.shape)
    max_err = float(jnp.abs(out - ref).max())
    # bf16 MXU inputs vs f32-HIGHEST reference: bf16-level tolerance.
    assert jnp.allclose(out, ref, atol=3e-2, rtol=3e-2), max_err

    print("KERNEL_OK")
</pallas_src>

<mosaic_0001>
module attributes {stable_mosaic.version = 11 : i64} {
  func.func @_conv_bn_silu_kernel(%arg0: i32, %arg1: memref<1x4x332xbf16, #tpu.memory_space<vmem>>, %arg2: memref<9x8x4xbf16, #tpu.memory_space<vmem>>, %arg3: memref<8x1xf32, #tpu.memory_space<vmem>>, %arg4: memref<1x8x256xf32, #tpu.memory_space<vmem>>) attributes {dimension_semantics = [#tpu.dimension_semantics<parallel>], iteration_bounds = array<i64: 2>, scalar_prefetch = 0 : i64, scratch_operands = 0 : i64, tpu.core_type = #tpu.core_type<tc>, window_params = [{transform_indices = @transform_0, window_bounds = array<i64: 1, 4, 332>}, {pipeline_mode = #tpu.pipeline_mode<synchronous>, transform_indices = @transform_1, window_bounds = array<i64: 9, 8, 4>}, {pipeline_mode = #tpu.pipeline_mode<synchronous>, transform_indices = @transform_2, window_bounds = array<i64: 8, 1>}, {transform_indices = @transform_3, window_bounds = array<i64: 1, 8, 256>}]} {
    %cst = arith.constant 0.000000e+00 : f32
    %0 = vector.broadcast %cst : f32 to vector<8x256xf32>
    %c0 = arith.constant 0 : index
    %c0_0 = arith.constant 0 : index
    %c0_1 = arith.constant 0 : index
    %1 = vector.load %arg1[%c0, %c0_0, %c0_1] : memref<1x4x332xbf16, #tpu.memory_space<vmem>>, vector<1x4x256xbf16>
    %2 = vector.shape_cast %1 : vector<1x4x256xbf16> to vector<4x256xbf16>
    %c0_2 = arith.constant 0 : index
    %c0_3 = arith.constant 0 : index
    %c0_4 = arith.constant 0 : index
    %3 = vector.load %arg2[%c0_2, %c0_3, %c0_4] : memref<9x8x4xbf16, #tpu.memory_space<vmem>>, vector<1x8x4xbf16>
    %4 = vector.shape_cast %3 : vector<1x8x4xbf16> to vector<8x4xbf16>
    %cst_5 = arith.constant dense<0.000000e+00> : vector<8x256xf32>
    %5 = tpu.matmul %4, %2, %cst_5 {dimension_numbers = #tpu.dot_dimension_numbers<[1], [0], [0], [1], [0, 0, 1, 1], [], []>} : vector<8x4xbf16>, vector<4x256xbf16>, vector<8x256xf32> -> vector<8x256xf32>
    %6 = arith.addf %0, %5 : vector<8x256xf32>
    %c0_6 = arith.constant 0 : index
    %c0_7 = arith.constant 0 : index
    %c2 = arith.constant 2 : index
    %7 = vector.load %arg1[%c0_6, %c0_7, %c2] : memref<1x4x332xbf16, #tpu.memory_space<vmem>>, vector<1x4x256xbf16>
    %8 = vector.shape_cast %7 : vector<1x4x256xbf16> to vector<4x256xbf16>
    %c1 = arith.constant 1 : index
    %c0_8 = arith.constant 0 : index
    %c0_9 = arith.constant 0 : index
    %9 = vector.load %arg2[%c1, %c0_8, %c0_9] : memref<9x8x4xbf16, #tpu.memory_space<vmem>>, vector<1x8x4xbf16>
    %10 = vector.shape_cast %9 : vector<1x8x4xbf16> to vector<8x4xbf16>
    %cst_10 = arith.constant dense<0.000000e+00> : vector<8x256xf32>
    %11 = tpu.matmul %10, %8, %cst_10 {dimension_numbers = #tpu.dot_dimension_numbers<[1], [0], [0], [1], [0, 0, 1, 1], [], []>} : vector<8x4xbf16>, vector<4x256xbf16>, vector<8x256xf32> -> vector<8x256xf32>
    %12 = arith.addf %6, %11 : vector<8x256xf32>
    %c0_11 = arith.constant 0 : index
    %c0_12 = arith.constant 0 : index
    %c4 = arith.constant 4 : index
    %13 = vector.load %arg1[%c0_11, %c0_12, %c4] : memref<1x4x332xbf16, #tpu.memory_space<vmem>>, vector<1x4x256xbf16>
    %14 = vector.shape_cast %13 : vector<1x4x256xbf16> to vector<4x256xbf16>
    %c2_13 = arith.constant 2 : index
    %c0_14 = arith.constant 0 : index
    %c0_15 = arith.constant 0 : index
    %15 = vector.load %arg2[%c2_13, %c0_14, %c0_15] : memref<9x8x4xbf16, #tpu.memory_space<vmem>>, vector<1x8x4xbf16>
    %16 = vector.shape_cast %15 : vector<1x8x4xbf16> to vector<8x4xbf16>
    %cst_16 = arith.constant dense<0.000000e+00> : vector<8x256xf32>
    %17 = tpu.matmul %16, %14, %cst_16 {dimension_numbers = #tpu.dot_dimension_numbers<[1], [0], [0], [1], [0, 0, 1, 1], [], []>} : vector<8x4xbf16>, vector<4x256xbf16>, vector<8x256xf32> -> vector<8x256xf32>
    %18 = arith.addf %12, %17 : vector<8x256xf32>
    %c0_17 = arith.constant 0 : index
    %c0_18 = arith.constant 0 : index
    %c36 = arith.constant 36 : index
    %19 = vector.load %arg1[%c0_17, %c0_18, %c36] : memref<1x4x332xbf16, #tpu.memory_space<vmem>>, vector<1x4x256xbf16>
    %20 = vector.shape_cast %19 : vector<1x4x256xbf16> to vector<4x256xbf16>
    %c3 = arith.constant 3 : index
    %c0_19 = arith.constant 0 : index
    %c0_20 = arith.constant 0 : index
    %21 = vector.load %arg2[%c3, %c0_19, %c0_20] : memref<9x8x4xbf16, #tpu.memory_space<vmem>>, vector<1x8x4xbf16>
    %22 = vector.shape_cast %21 : vector<1x8x4xbf16> to vector<8x4xbf16>
    %cst_21 = arith.constant dense<0.000000e+00> : vector<8x256xf32>
    %23 = tpu.matmul %22, %20, %cst_21 {dimension_numbers = #tpu.dot_dimension_numbers<[1], [0], [0], [1], [0, 0, 1, 1], [], []>} : vector<8x4xbf16>, vector<4x256xbf16>, vector<8x256xf32> -> vector<8x256xf32>
    %24 = arith.addf %18, %23 : vector<8x256xf32>
    %c0_22 = arith.constant 0 : index
    %c0_23 = arith.constant 0 : index
    %c38 = arith.constant 38 : index
    %25 = vector.load %arg1[%c0_22, %c0_23, %c38] : memref<1x4x332xbf16, #tpu.memory_space<vmem>>, vector<1x4x256xbf16>
    %26 = vector.shape_cast %25 : vector<1x4x256xbf16> to vector<4x256xbf16>
    %c4_24 = arith.constant 4 : index
    %c0_25 = arith.constant 0 : index
    %c0_26 = arith.constant 0 : index
    %27 = vector.load %arg2[%c4_24, %c0_25, %c0_26] : memref<9x8x4xbf16, #tpu.memory_space<vmem>>, vector<1x8x4xbf16>
    %28 = vector.shape_cast %27 : vector<1x8x4xbf16> to vector<8x4xbf16>
    %cst_27 = arith.constant dense<0.000000e+00> : vector<8x256xf32>
    %29 = tpu.matmul %28, %26, %cst_27 {dimension_numbers = #tpu.dot_dimension_numbers<[1], [0], [0], [1], [0, 0, 1, 1], [], []>} : vector<8x4xbf16>, vector<4x256xbf16>, vector<8x256xf32> -> vector<8x256xf32>
    %30 = arith.addf %24, %29 : vector<8x256xf32>
    %c0_28 = arith.constant 0 : index
    %c0_29 = arith.constant 0 : index
    %c40 = arith.constant 40 : index
    %31 = vector.load %arg1[%c0_28, %c0_29, %c40] : memref<1x4x332xbf16, #tpu.memory_space<vmem>>, vector<1x4x256xbf16>
    %32 = vector.shape_cast %31 : vector<1x4x256xbf16> to vector<4x256xbf16>
    %c5 = arith.constant 5 : index
    %c0_30 = arith.constant 0 : index
    %c0_31 = arith.constant 0 : index
    %33 = vector.load %arg2[%c5, %c0_30, %c0_31] : memref<9x8x4xbf16, #tpu.memory_space<vmem>>, vector<1x8x4xbf16>
    %34 = vector.shape_cast %33 : vector<1x8x4xbf16> to vector<8x4xbf16>
    %cst_32 = arith.constant dense<0.000000e+00> : vector<8x256xf32>
    %35 = tpu.matmul %34, %32, %cst_32 {dimension_numbers = #tpu.dot_dimension_numbers<[1], [0], [0], [1], [0, 0, 1, 1], [], []>} : vector<8x4xbf16>, vector<4x256xbf16>, vector<8x256xf32> -> vector<8x256xf32>
    %36 = arith.addf %30, %35 : vector<8x256xf32>
    %c0_33 = arith.constant 0 : index
    %c0_34 = arith.constant 0 : index
    %c72 = arith.constant 72 : index
    %37 = vector.load %arg1[%c0_33, %c0_34, %c72] : memref<1x4x332xbf16, #tpu.memory_space<vmem>>, vector<1x4x256xbf16>
    %38 = vector.shape_cast %37 : vector<1x4x256xbf16> to vector<4x256xbf16>
    %c6 = arith.constant 6 : index
    %c0_35 = arith.constant 0 : index
    %c0_36 = arith.constant 0 : index
    %39 = vector.load %arg2[%c6, %c0_35, %c0_36] : memref<9x8x4xbf16, #tpu.memory_space<vmem>>, vector<1x8x4xbf16>
    %40 = vector.shape_cast %39 : vector<1x8x4xbf16> to vector<8x4xbf16>
    %cst_37 = arith.constant dense<0.000000e+00> : vector<8x256xf32>
    %41 = tpu.matmul %40, %38, %cst_37 {dimension_numbers = #tpu.dot_dimension_numbers<[1], [0], [0], [1], [0, 0, 1, 1], [], []>} : vector<8x4xbf16>, vector<4x256xbf16>, vector<8x256xf32> -> vector<8x256xf32>
    %42 = arith.addf %36, %41 : vector<8x256xf32>
    %c0_38 = arith.constant 0 : index
    %c0_39 = arith.constant 0 : index
    %c74 = arith.constant 74 : index
    %43 = vector.load %arg1[%c0_38, %c0_39, %c74] : memref<1x4x332xbf16, #tpu.memory_space<vmem>>, vector<1x4x256xbf16>
    %44 = vector.shape_cast %43 : vector<1x4x256xbf16> to vector<4x256xbf16>
    %c7 = arith.constant 7 : index
    %c0_40 = arith.constant 0 : index
    %c0_41 = arith.constant 0 : index
    %45 = vector.load %arg2[%c7, %c0_40, %c0_41] : memref<9x8x4xbf16, #tpu.memory_space<vmem>>, vector<1x8x4xbf16>
    %46 = vector.shape_cast %45 : vector<1x8x4xbf16> to vector<8x4xbf16>
    %cst_42 = arith.constant dense<0.000000e+00> : vector<8x256xf32>
    %47 = tpu.matmul %46, %44, %cst_42 {dimension_numbers = #tpu.dot_dimension_numbers<[1], [0], [0], [1], [0, 0, 1, 1], [], []>} : vector<8x4xbf16>, vector<4x256xbf16>, vector<8x256xf32> -> vector<8x256xf32>
    %48 = arith.addf %42, %47 : vector<8x256xf32>
    %c0_43 = arith.constant 0 : index
    %c0_44 = arith.constant 0 : index
    %c76 = arith.constant 76 : index
    %49 = vector.load %arg1[%c0_43, %c0_44, %c76] : memref<1x4x332xbf16, #tpu.memory_space<vmem>>, vector<1x4x256xbf16>
    %50 = vector.shape_cast %49 : vector<1x4x256xbf16> to vector<4x256xbf16>
    %c8 = arith.constant 8 : index
    %c0_45 = arith.constant 0 : index
    %c0_46 = arith.constant 0 : index
    %51 = vector.load %arg2[%c8, %c0_45, %c0_46] : memref<9x8x4xbf16, #tpu.memory_space<vmem>>, vector<1x8x4xbf16>
    %52 = vector.shape_cast %51 : vector<1x8x4xbf16> to vector<8x4xbf16>
    %cst_47 = arith.constant dense<0.000000e+00> : vector<8x256xf32>
    %53 = tpu.matmul %52, %50, %cst_47 {dimension_numbers = #tpu.dot_dimension_numbers<[1], [0], [0], [1], [0, 0, 1, 1], [], []>} : vector<8x4xbf16>, vector<4x256xbf16>, vector<8x256xf32> -> vector<8x256xf32>
    %54 = arith.addf %48, %53 : vector<8x256xf32>
    %c0_48 = arith.constant 0 : index
    %c0_49 = arith.constant 0 : index
    %55 = vector.load %arg3[%c0_48, %c0_49] : memref<8x1xf32, #tpu.memory_space<vmem>>, vector<8x1xf32>
    %56 = vector.broadcast %55 : vector<8x1xf32> to vector<8x256xf32>
    %57 = arith.addf %54, %56 : vector<8x256xf32>
    %58 = arith.negf %57 : vector<8x256xf32>
    %59 = math.exp %58 : vector<8x256xf32>
    %cst_50 = arith.constant 1.000000e+00 : f32
    %60 = vector.broadcast %cst_50 : f32 to vector<8x256xf32>
    %61 = arith.addf %60, %59 : vector<8x256xf32>
    %62 = arith.divf %60, %61 : vector<8x256xf32>
    %63 = arith.mulf %57, %62 : vector<8x256xf32>
    %c0_51 = arith.constant 0 : index
    %c0_52 = arith.constant 0 : index
    %c0_53 = arith.constant 0 : index
    %64 = vector.load %arg4[%c0_51, %c0_52, %c0_53] : memref<1x8x256xf32, #tpu.memory_space<vmem>>, vector<1x8x256xf32>
    %65 = vector.shape_cast %64 : vector<1x8x256xf32> to vector<8x256xf32>
    %66 = vector.shape_cast %63 : vector<8x256xf32> to vector<1x8x256xf32>
    tpu.vector_store %arg4[%c0_51, %c0_52, %c0_53], %66 {strides = array<i32>} : memref<1x8x256xf32, #tpu.memory_space<vmem>>, vector<1x8x256xf32>,
    return
  }
  func.func @transform_0(%arg0: i32) -> (i32, i32, i32) {
    %c0_i32 = arith.constant 0 : i32
    %c0_i32_0 = arith.constant 0 : i32
    %c0_i32_1 = arith.constant 0 : i32
    return %arg0, %c0_i32, %c0_i32_0 : i32, i32, i32
  }
  func.func @transform_1(%arg0: i32) -> (i32, i32, i32) {
    %c0_i32 = arith.constant 0 : i32
    %c0_i32_0 = arith.constant 0 : i32
    %c0_i32_1 = arith.constant 0 : i32
    %c0_i32_2 = arith.constant 0 : i32
    return %c0_i32, %c0_i32_0, %c0_i32_1 : i32, i32, i32
  }
  func.func @transform_2(%arg0: i32) -> (i32, i32) {
    %c0_i32 = arith.constant 0 : i32
    %c0_i32_0 = arith.constant 0 : i32
    %c0_i32_1 = arith.constant 0 : i32
    return %c0_i32, %c0_i32_0 : i32, i32
  }
  func.func @transform_3(%arg0: i32) -> (i32, i32, i32) {
    %c0_i32 = arith.constant 0 : i32
    %c0_i32_0 = arith.constant 0 : i32
    %c0_i32_1 = arith.constant 0 : i32
    return %arg0, %c0_i32, %c0_i32_0 : i32, i32, i32
  }
}

</mosaic_0001>

<bundles_post_ra>
// kernel: tpu_custom_call.1
= control target key start
LH: loop header
LB: loop body
LE: loop exit
PB: predicated region body
PF: predicated region fallthrough
CT: control target
= control target key end

     0   :  { %8 = vsyncpa [#allocation3], 0  ;;  %s1156_s0 = inlined_call_operand.vmem [shape: bf16[2,4,332], index: 0, kind: input, shape index: {}]   ;;  %s1157_s1 = inlined_call_operand.vmem [shape: bf16[9,8,4], index: 1, kind: input, shape index: {}]   ;;  %s1158_s2 = inlined_call_operand.vmem [shape: f32[8,1], index: 2, kind: input, shape index: {}]   ;;  %s1159_s3 = inlined_call_operand.hbm [shape: f32[2,8,256], index: 3, kind: output, shape index: {}]  }
   0x1   :  { %10 = vsyncpa [#allocation3 + $0x1], 0  ;;  %s982_s12 = smov 0   ;;  %s984_s13 = smov 0  }
   0x2   :  { %s986_s14 = smov 0   ;;  %s988_s15 = smov 0  }
   0x3 LB: > { %s1003_s16 = sadd.s32 4294967295, %s951_s15   ;;  %s791_s17 = sadd.s32 4294967294, %s951_s15   ;;  %s951_s15 = sphi %s988_s15, %s1165_s15   ;;  %s947_s14 = sphi %s986_s14, %s1164_s14   ;;  %s943_s13 = sphi %s984_s13, %s1163_s13   ;;  %s939_s12 = sphi %s982_s12, %s1162_s12  }
   0x4   : > { %s1007_s18 = sadd.s32 1, %s951_s15   ;;  %s91_s19 = sadd.s32 1, %s947_s14 }
   0x5   : > { %s88_s20 = ssub.s32 %s951_s15, %s1007_s18  ;;  %p101_p0 = scmp.ne.s32.totalorder %s947_s14, %s943_s13 }
   0x6   : > { %p89_p1 = scmp.eq.s32.totalorder %s88_s20, 0  ;;  %p102_p2 = scmp.eq.s32.totalorder %s1003_s16, 1 }
   0x7   : > { %p107_p3 = scmp.ne.s32.totalorder %s943_s13, %s939_s12  ;;  %p108_p4 = scmp.eq.s32.totalorder %s791_s17, 1 }
   0x8   : > { %s1018_s21 = scalar_select %p89_p1, %s947_s14, %s91_s19  }
   0x9   : > { %p1020_p5 = por %p102_p2, %p101_p0  ;;  %p1024_p6 = por %p108_p4, %p107_p3 }
   0xa   : > { %p794_p7 = scmp.ge.s32.totalorder %s951_s15, 1  ;;  %p140_p8 = scmp.lt.s32.totalorder %s951_s15, 3 }
   0xc   : > { %p141_p9 = pnand %p794_p7, %p140_p8 }
   0xd   : > { %p164_p10 = scmp.lt.s32.totalorder (!%p141_p9), %s1003_s16, 1  ;;  %s953_s29 = smov (!%p141_p9), 126  }
   0xe   : > { %144 = sbr.rel (%p141_p9) target bundleno = 389 (0x185), region = 32  ;;  %s954_s30 = smov (!%p141_p9), 124  }
   0xf   : > { %s955_s4 = smov (!%p141_p9), 92   ;;  %s956_s5 = smov (!%p141_p9), 90  }
  0x10   : > { %s957_s6 = smov (!%p141_p9), 88   ;;  %s958_s7 = smov (!%p141_p9), 56  }
  0x11   : > { %s959_s8 = smov (!%p141_p9), 54   ;;  %s960_s9 = smov (!%p141_p9), 52  }
  0x12   : > { %s161_s17 = sand.u32 (!%p141_p9), 1, %s943_s13   ;;  %s830_s20 = sshll.u32 (!%p141_p9), %s1003_s16, 4 }
  0x13   : > { %s165_s24 = scalar_select %p164_p10, %s1003_s16, 1  ;;  %vm196_vm0 = vcmask 1041408   ;;  %v171_v37 = vld [vmem:[%s1157_s1] sm:$0xf]  ;;  %vm192_vm1 = vcmask 31744   ;;  %vm283_vm2 = vcmask 1014784  }
  0x14   : > { %vm189_vm3 = vcmask 1031168   ;;  %v797_v49 = vld [vmem:[%s1157_s1 + $0x4] sm:$0xf]  ;;  %vm340_vm4 = vcmask 752640   ;;  %v802_v57 = vld [vmem:[%s1157_s1 + $0x8] sm:$0xf]  ;;  %s727_s26 = scalar_lea.hbm %s1159_s3, %s830_s20 }
  0x15   : > { %s831_s25 = smul.u32 6, %s165_s24  ;;  %v805_v61 = vld [vmem:[%s1157_s1 + $0xc] sm:$0xf]  ;;  %vm397_vm5 = vcmask 736256   ;;  %vm454_vm6 = vcmask 719872   ;;  %vm511_vm7 = vcmask 457728  }
  0x16   : > { %vm568_vm8 = vcmask 441344   ;;  %vm625_vm9 = vcmask 424960   ;;  %s795_s19 = sshll.u32 %s161_s17, 4 }
  0x17   : > { %s1035_s28 = scalar_lea.vmem %s1156_s0, %s831_s25  ;;  %s163_s16 = scalar_lea.vmem [#allocation2], %s795_s19 }
  0x18   : > { %v172_v0 = vld [vmem:[%s1035_s28] sm:$0x3f]  ;;  %s729_s27 = sshll.u32 %s163_s16, 4  ;;  %s730_s27 = int_to_ptr.vmem [resolvable:$true] %s729_s27 }
  0x19   : > { %176 = vst [vmem:[#allocation1] ss:$4 sm:$0xff] %v172_v0  ;;  %v170_v1 = vld [vmem:[%s1035_s28] sm:$0xf] }
  0x1a   : > { %v266_v5 = vld [vmem:[%s1035_s28] sm:$0x3f] }
  0x1b   : > { %v323_v8 = vld [vmem:[%s1035_s28] sm:$0x3f] }
  0x1c   : > { %v380_v12 = vld [vmem:[%s1035_s28] sm:$0x3f] }
  0x1d   : > { %v437_v16 = vld [vmem:[%s1035_s28] sm:$0x3f] }
  0x1e   : > { %v494_v20 = vld [vmem:[%s1035_s28] sm:$0x3f] }
  0x1f   : > { %v551_v24 = vld [vmem:[%s1035_s28] sm:$0x3f] }
  0x20   : > { %v177_v2 = vld.sshfl [vmem:[#allocation1] sm:$0xff pattern:$0x73625140]  ;;  %v181_v3 = vld.sshfl [vmem:[#allocation1 + $0x10] sm:$0xff pattern:$0x73625140] }
  0x21   : > { %183 = vrot.lane.b32.xlu0 %v177_v2, %s953_s29  ;;  %187 = vrot.lane.b32.xlu1 %v181_v3, %s953_s29  ;;  %v179_v4 = vld.sshfl [vmem:[#allocation1 + $0x8] sm:$0xff pattern:$0x73625140]  ;;  %v608_v28 = vld [vmem:[%s1035_s28] sm:$0x3f]  ;;  %s731_s28 = sshll.u32 %s727_s26, 4  ;;  %s732_s28 = int_to_ptr.hbm [resolvable:$true] %s731_s28 }
  0x22   : > { %230 = vst [vmem:[#allocation1] ss:$4 sm:$0xff] %v170_v1 }
  0x29   : > { %185 = vrot.lane.b32.xlu0 %v179_v4, %s953_s29  ;;  %v1040_v6 = vld.sshfl [vmem:[#allocation1] sm:$0xff pattern:$0x73625140]  ;;  %v1042_v7 = vld.sshfl [vmem:[#allocation1 + $0x8] sm:$0xff pattern:$0x73625140] }
  0x2a   : > { %270 = vst [vmem:[#allocation1] ss:$4 sm:$0xff] %v266_v5  ;;  %v236_v35 = vsel %vm196_vm0, %v1040_v6, 0  ;;  %v238_v36 = vsel %vm196_vm0, %v1042_v7, 0  ;;  %v808_v6 = vld [vmem:[%s1157_s1 + $0x10] sm:$0xf] }
  0x2b   : > { %247 = vmatpush.bf16.msra.mxu2 %v236_v35  ;;  %260 = vmatpush.bf16.msra.mxu3 %v238_v36  ;;  %s716_s29 = scalar_lea.sflag [#allocation3], %s161_s17 }
  0x2e   : > { %800 = vmatmul.msk.bf16.vlgmr.msra.gmra.mxu2 %vm192_vm1, %v171_v37  ;;  %801 = vmatmul.msk.bf16.vlgmr.msra.gmra.mxu3 %vm192_vm1, %v171_v37 }
  0x31   : > { %v271_v9 = vld.sshfl [vmem:[#allocation1] sm:$0xff pattern:$0x73625140]  ;;  %v273_v10 = vld.sshfl [vmem:[#allocation1 + $0x8] sm:$0xff pattern:$0x73625140] }
  0x32   : > { %277 = vrot.lane.b32.xlu1 %v271_v9, %s954_s30  ;;  %v275_v11 = vld.sshfl [vmem:[#allocation1 + $0x10] sm:$0xff pattern:$0x73625140]  ;;  %279 = vrot.lane.b32.xlu2 %v273_v10, %s954_s30 }
  0x33   : > { %327 = vst [vmem:[#allocation1] ss:$4 sm:$0xff] %v323_v8 }
  0x3a   : > { %v332_v13 = vld.sshfl [vmem:[#allocation1 + $0x10] sm:$0xff pattern:$0x73625140]  ;;  %v330_v14 = vld.sshfl [vmem:[#allocation1 + $0x8] sm:$0xff pattern:$0x73625140]  ;;  %281 = vrot.lane.b32.xlu2 %v275_v11, %s954_s30 }
  0x3b   : > { %336 = vrot.lane.b32.xlu1 %v330_v14, %s955_s4  ;;  %v328_v15 = vld.sshfl [vmem:[#allocation1] sm:$0xff pattern:$0x73625140]  ;;  %s903_s30 = sshra.s32 %s732_s28, 4  ;;  %s904_s30 = int_to_ptr.hbm [resolvable:$true] %s903_s30 }
  0x3c   : > { %334 = vrot.lane.b32.xlu0 %v328_v15, %s955_s4  ;;  %384 = vst [vmem:[#allocation1] ss:$4 sm:$0xff] %v380_v12  ;;  %v665_v14 = vld [vmem:[%s1158_s2] sm:$0xff]  ;;  %v961_v15 = vmov 0   ;;  %p910_p0 = scmp.lt.s32.totalorder %s904_s30, %s1159_s3 }
  0x3d   : > { %880 = vset.pattern.permute.xlu0 %v961_v15 }
  0x42   : > { %338 = vrot.lane.b32.xlu2 %v332_v13, %s955_s4  ;;  %v811_v13 = vld [vmem:[%s1157_s1 + $0x14] sm:$0xf]  ;;  %s905_s4 = scalar_lea.hbm %s904_s30, 16 }
  0x43   : > { %v387_v17 = vld.sshfl [vmem:[#allocation1 + $0x8] sm:$0xff pattern:$0x73625140]  ;;  %v389_v18 = vld.sshfl [vmem:[#allocation1 + $0x10] sm:$0xff pattern:$0x73625140]  ;;  %p906_p11 = scmp.ne.s32.totalorder %s904_s30, %s905_s4 }
  0x44   : > { %393 = vrot.lane.b32.xlu1 %v387_v17, %s956_s5  ;;  %v385_v19 = vld.sshfl [vmem:[#allocation1] sm:$0xff pattern:$0x73625140] }
  0x45   : > { %391 = vrot.lane.b32.xlu0 %v385_v19, %s956_s5  ;;  %441 = vst [vmem:[#allocation1] ss:$4 sm:$0xff] %v437_v16  ;;  %p907_p12 = pnand %p906_p11, %p1020_p5 }
  0x47   : > { %p908_p13 = pneg %p907_p12 }
  0x4a   : > { %395 = vrot.lane.b32.xlu2 %v389_v18, %s956_s5 }
  0x4c   : > { %v444_v21 = vld.sshfl [vmem:[#allocation1 + $0x8] sm:$0xff pattern:$0x73625140]  ;;  %v446_v22 = vld.sshfl [vmem:[#allocation1 + $0x10] sm:$0xff pattern:$0x73625140] }
  0x4d   : > { %450 = vrot.lane.b32.xlu1 %v444_v21, %s957_s6  ;;  %v442_v23 = vld.sshfl [vmem:[#allocation1] sm:$0xff pattern:$0x73625140] }
  0x4e   : > { %448 = vrot.lane.b32.xlu0 %v442_v23, %s957_s6  ;;  %498 = vst [vmem:[#allocation1] ss:$4 sm:$0xff] %v494_v20  ;;  %v814_v23 = vld [vmem:[%s1157_s1 + $0x18] sm:$0xf] }
  0x52   : > { %452 = vrot.lane.b32.xlu2 %v446_v22, %s957_s6 }
  0x55   : > { %v501_v25 = vld.sshfl [vmem:[#allocation1 + $0x8] sm:$0xff pattern:$0x73625140]  ;;  %v503_v26 = vld.sshfl [vmem:[#allocation1 + $0x10] sm:$0xff pattern:$0x73625140] }
  0x56   : > { %507 = vrot.lane.b32.xlu1 %v501_v25, %s958_s7  ;;  %v499_v27 = vld.sshfl [vmem:[#allocation1] sm:$0xff pattern:$0x73625140] }
  0x57   : > { %505 = vrot.lane.b32.xlu0 %v499_v27, %s958_s7  ;;  %555 = vst [vmem:[#allocation1] ss:$4 sm:$0xff] %v551_v24 }
  0x5a   : > { %509 = vrot.lane.b32.xlu2 %v503_v26, %s958_s7  ;;  %s909_s7 = scalar_lea.hbm %s1159_s3, 32 }
  0x5b   : > { %p911_p1 = scmp.lt.s32.totalorder %s909_s7, %s905_s4 }
  0x5d   : > { %p912_p2 = por %p911_p1, %p910_p0 }
  0x5e   : > { %v560_v29 = vld.sshfl [vmem:[#allocation1 + $0x10] sm:$0xff pattern:$0x73625140]  ;;  %v558_v30 = vld.sshfl [vmem:[#allocation1 + $0x8] sm:$0xff pattern:$0x73625140] }
  0x5f   : > { %564 = vrot.lane.b32.xlu1 %v558_v30, %s959_s8  ;;  %v556_v31 = vld.sshfl [vmem:[#allocation1] sm:$0xff pattern:$0x73625140]  ;;  %p913_p3 = pnand %p912_p2, %p908_p13 }
  0x60   : > { %562 = vrot.lane.b32.xlu0 %v556_v31, %s959_s8  ;;  %612 = vst [vmem:[#allocation1] ss:$4 sm:$0xff] %v608_v28  ;;  %v817_v31 = vld [vmem:[%s1157_s1 + $0x1c] sm:$0xf] }
  0x62   : > { %566 = vrot.lane.b32.xlu2 %v560_v29, %s959_s8 }
  0x67   : > { %v615_v32 = vld.sshfl [vmem:[#allocation1 + $0x8] sm:$0xff pattern:$0x73625140]  ;;  %v613_v33 = vld.sshfl [vmem:[#allocation1] sm:$0xff pattern:$0x73625140] }
  0x68   : > { %621 = vrot.lane.b32.xlu1 %v615_v32, %s960_s9  ;;  %619 = vrot.lane.b32.xlu0 %v613_v33, %s960_s9  ;;  %v617_v34 = vld.sshfl [vmem:[#allocation1 + $0x10] sm:$0xff pattern:$0x73625140] }
  0x6a   : > { %623 = vrot.lane.b32.xlu2 %v617_v34, %s960_s9 }
  0x70   : > { %668 = vperm.xlu0 %880, %v665_v14  }
  0x8c   : > { %v280_v38 = vpop.permute.xlu2 %279 }
  0x93   : > { %v184_v39 = vpop.permute.xlu0 %183  ;;  %v188_v41 = vpop.permute.xlu1 %187 }
  0x94   : > { %v282_v40 = vpop.permute.xlu2 %281 }
  0x95   : > { %v285_v42 = vsel %vm283_vm2, %v280_v38, %v282_v40 }
  0x96   : > { %v293_v46 = vsel %vm196_vm0, %v285_v42, 0 }
  0x9b   : > { %v186_v43 = vpop.permute.xlu0 %185 }
  0x9c   : > { %v190_v44 = vsel %vm189_vm3, %v184_v39, %v186_v43  ;;  %v191_v45 = vsel %vm189_vm3, %v186_v43, %v188_v41  ;;  %v339_v53 = vpop.permute.xlu2 %338  ;;  %v820_v39 = vld [vmem:[%s1157_s1 + $0x20] sm:$0xf] }
  0x9d   : > { %v198_v47 = vsel %vm196_vm0, %v190_v44, 0  ;;  %v201_v48 = vsel %vm196_vm0, %v191_v45, 0 }
  0x9e   : > { %210 = vmatpush.bf16.msra.mxu0 %v198_v47  ;;  %223 = vmatpush.bf16.msra.mxu1 %v201_v48 }
  0xa1   : > { %798 = vmatmul.msk.bf16.vlgmr.msra.gmra.mxu0 %vm192_vm1, %v797_v49  ;;  %799 = vmatmul.msk.bf16.vlgmr.msra.gmra.mxu1 %vm192_vm1, %v797_v49 }
  0xa2   : > { %315 = vmatpush.bf16.msrb.mxu1 %v293_v46 }
  0xa4   : > { %v278_v50 = vpop.permute.xlu1 %277  ;;  %v396_v62 = vpop.permute.xlu2 %395 }
  0xa5   : > { %v284_v51 = vsel %vm283_vm2, %v278_v50, %v280_v38 }
  0xa6   : > { %v290_v52 = vsel %vm196_vm0, %v284_v51, 0 }
  0xa7   : > { %302 = vmatpush.bf16.msrb.mxu0 %v290_v52 }
  0xac   : > { %v453_v5 = vpop.permute.xlu2 %452 }
  0xad   : > { %v337_v54 = vpop.permute.xlu1 %336 }
  0xae   : > { %v335_v55 = vpop.permute.xlu0 %334  ;;  %v342_v56 = vsel %vm340_vm4, %v337_v54, %v339_v53 }
  0xaf   : > { %v341_v58 = vsel %vm340_vm4, %v335_v55, %v337_v54  ;;  %v350_v59 = vsel %vm196_vm0, %v342_v56, 0 }
  0xb0   : > { %v347_v60 = vsel %vm196_vm0, %v341_v58, 0  ;;  %372 = vmatpush.bf16.msrb.mxu3 %v350_v59 }
  0xb1   : > { %359 = vmatpush.bf16.msrb.mxu2 %v347_v60  ;;  %803 = vmatmul.msk.bf16.vlgmr.msrb.gmra.mxu0 %vm192_vm1, %v802_v57  ;;  %v249_v40 = vpop.f32.mrf.mxu2  ;;  %v262_v41 = vpop.f32.mrf.mxu3 }
  0xb2   : > { %804 = vmatmul.msk.bf16.vlgmr.msrb.gmra.mxu1 %vm192_vm1, %v802_v57 }
  0xb3   : > { %807 = vmatmul.msk.bf16.vlgmr.msrb.gmra.mxu3 %vm192_vm1, %v805_v61 }
  0xb4   : > { %806 = vmatmul.msk.bf16.vlgmr.msrb.gmra.mxu2 %vm192_vm1, %v805_v61  ;;  %v510_v16 = vpop.permute.xlu2 %509 }
  0xb6   : > { %v394_v63 = vpop.permute.xlu1 %393 }
  0xb7   : > { %v399_v0 = vsel %vm397_vm5, %v394_v63, %v396_v62  ;;  %v392_v1 = vpop.permute.xlu0 %391 }
  0xb8   : > { %v407_v2 = vsel %vm196_vm0, %v399_v0, 0  ;;  %v398_v3 = vsel %vm397_vm5, %v392_v1, %v394_v63 }
  0xb9   : > { %v404_v4 = vsel %vm196_vm0, %v398_v3, 0  ;;  %429 = vmatpush.bf16.msra.mxu1 %v407_v2  ;;  %v251_v42 = vpop.f32.mrf.mxu2  ;;  %v264_v43 = vpop.f32.mrf.mxu3 }
  0xba   : > { %416 = vmatpush.bf16.msra.mxu0 %v404_v4 }
  0xbc   : > { %v567_v24 = vpop.permute.xlu2 %566 }
  0xbf   : > { %v451_v7 = vpop.permute.xlu1 %450 }
  0xc0   : > { %v456_v8 = vsel %vm454_vm6, %v451_v7, %v453_v5  ;;  %v449_v9 = vpop.permute.xlu0 %448 }
  0xc1   : > { %v464_v10 = vsel %vm196_vm0, %v456_v8, 0  ;;  %v455_v11 = vsel %vm454_vm6, %v449_v9, %v451_v7  ;;  %809 = vmatmul.msk.bf16.vlgmr.msra.gmra.mxu0 %vm192_vm1, %v808_v6 }
  0xc2   : > { %v461_v12 = vsel %vm196_vm0, %v455_v11, 0  ;;  %486 = vmatpush.bf16.msra.mxu3 %v464_v10  ;;  %810 = vmatmul.msk.bf16.vlgmr.msra.gmra.mxu1 %vm192_vm1, %v808_v6 }
  0xc3   : > { %473 = vmatpush.bf16.msra.mxu2 %v461_v12 }
  0xc4   : > { %v624_v32 = vpop.permute.xlu2 %623 }
  0xc5   : > { %813 = vmatmul.msk.bf16.vlgmr.msra.gmra.mxu3 %vm192_vm1, %v811_v13 }
  0xc6   : > { %812 = vmatmul.msk.bf16.vlgmr.msra.gmra.mxu2 %vm192_vm1, %v811_v13 }
  0xc8   : > { %v508_v17 = vpop.permute.xlu1 %507 }
  0xc9   : > { %v513_v18 = vsel %vm511_vm7, %v508_v17, %v510_v16  ;;  %v506_v19 = vpop.permute.xlu0 %505 }
  0xca   : > { %v521_v20 = vsel %vm196_vm0, %v513_v18, 0  ;;  %v512_v21 = vsel %vm511_vm7, %v506_v19, %v508_v17 }
  0xcb   : > { %v518_v22 = vsel %vm196_vm0, %v512_v21, 0  ;;  %543 = vmatpush.bf16.msrb.mxu1 %v521_v20 }
  0xcc   : > { %530 = vmatpush.bf16.msrb.mxu0 %v518_v22 }
  0xd1   : > { %v565_v25 = vpop.permute.xlu1 %564  ;;  %815 = vmatmul.msk.bf16.vlgmr.msrb.gmra.mxu0 %vm192_vm1, %v814_v23 }
  0xd2   : > { %v570_v26 = vsel %vm568_vm8, %v565_v25, %v567_v24  ;;  %v563_v27 = vpop.permute.xlu0 %562  ;;  %816 = vmatmul.msk.bf16.vlgmr.msrb.gmra.mxu1 %vm192_vm1, %v814_v23 }
  0xd3   : > { %v578_v28 = vsel %vm196_vm0, %v570_v26, 0  ;;  %v569_v29 = vsel %vm568_vm8, %v563_v27, %v565_v25 }
  0xd4   : > { %v575_v30 = vsel %vm196_vm0, %v569_v29, 0  ;;  %600 = vmatpush.bf16.msrb.mxu3 %v578_v28 }
  0xd5   : > { %587 = vmatpush.bf16.msrb.mxu2 %v575_v30 }
  0xd7   : > { %819 = vmatmul.msk.bf16.vlgmr.msrb.gmra.mxu3 %vm192_vm1, %v817_v31 }
  0xd8   : > { %818 = vmatmul.msk.bf16.vlgmr.msrb.gmra.mxu2 %vm192_vm1, %v817_v31 }
  0xda   : > { %v622_v33 = vpop.permute.xlu1 %621  ;;  %v620_v34 = vpop.permute.xlu0 %619 }
  0xdb   : > { %v627_v35 = vsel %vm625_vm9, %v622_v33, %v624_v32  ;;  %v626_v36 = vsel %vm625_vm9, %v620_v34, %v622_v33 }
  0xdc   : > { %v635_v37 = vsel %vm196_vm0, %v627_v35, 0  ;;  %v632_v38 = vsel %vm196_vm0, %v626_v36, 0 }
  0xdd   : > { %644 = vmatpush.bf16.msra.mxu0 %v632_v38  ;;  %657 = vmatpush.bf16.msra.mxu1 %v635_v37 }
  0xe1   : > { %821 = vmatmul.msk.bf16.vlgmr.msra.gmra.mxu0 %vm192_vm1, %v820_v39 }
  0xe2   : > { %822 = vmatmul.msk.bf16.vlgmr.msra.gmra.mxu1 %vm192_vm1, %v820_v39  ;;  %v669_v21 = vpop.permute.xlu0 %668 }
 0x11e   : > { %v212_v44 = vpop.f32.mrf.mxu0  ;;  %v225_v45 = vpop.f32.mrf.mxu1 }
 0x11f   : > { %v250_v1 = vadd.f32 %v249_v40, %v212_v44  ;;  %v263_v3 = vadd.f32 %v262_v41, %v225_v45 }
 0x126   : > { %v214_v46 = vpop.f32.mrf.mxu0  ;;  %v227_v47 = vpop.f32.mrf.mxu1 }
 0x12e   : > { %v304_v48 = vpop.f32.mrf.mxu0 }
 0x12f   : > { %v317_v49 = vpop.f32.mrf.mxu1  ;;  %v321_v4 = vadd.f32 %v304_v48, %v250_v1 }
 0x130   : > { %v322_v5 = vadd.f32 %v317_v49, %v263_v3 }
 0x136   : > { %v374_v50 = vpop.f32.mrf.mxu3  ;;  %v306_v51 = vpop.f32.mrf.mxu0 }
 0x137   : > { %v361_v52 = vpop.f32.mrf.mxu2  ;;  %v319_v53 = vpop.f32.mrf.mxu1  ;;  %v379_v7 = vadd.f32 %v374_v50, %v322_v5 }
 0x138   : > { %v378_v6 = vadd.f32 %v361_v52, %v321_v4 }
 0x13e   : > { %v376_v54 = vpop.f32.mrf.mxu3  ;;  %v418_v55 = vpop.f32.mrf.mxu0 }
 0x13f   : > { %v363_v56 = vpop.f32.mrf.mxu2  ;;  %v431_v57 = vpop.f32.mrf.mxu1  ;;  %v435_v9 = vadd.f32 %v418_v55, %v378_v6 }
 0x140   : > { %v436_v11 = vadd.f32 %v431_v57, %v379_v7 }
 0x146   : > { %v420_v58 = vpop.f32.mrf.mxu0 }
 0x147   : > { %v433_v59 = vpop.f32.mrf.mxu1 }
 0x148   : > { %v488_v60 = vpop.f32.mrf.mxu3 }
 0x149   : > { %v475_v61 = vpop.f32.mrf.mxu2  ;;  %v493_v13 = vadd.f32 %v488_v60, %v436_v11 }
 0x14a   : > { %v492_v12 = vadd.f32 %v475_v61, %v435_v9 }
 0x14e   : > { %v532_v62 = vpop.f32.mrf.mxu0 }
 0x14f   : > { %v545_v63 = vpop.f32.mrf.mxu1  ;;  %v549_v15 = vadd.f32 %v532_v62, %v492_v12 }
 0x150   : > { %v490_v0 = vpop.f32.mrf.mxu3  ;;  %v550_v17 = vadd.f32 %v545_v63, %v493_v13 }
 0x151   : > { %v477_v2 = vpop.f32.mrf.mxu2 }
 0x156   : > { %v534_v8 = vpop.f32.mrf.mxu0 }
 0x157   : > { %v547_v10 = vpop.f32.mrf.mxu1 }
 0x15a   : > { %v602_v14 = vpop.f32.mrf.mxu3 }
 0x15b   : > { %v589_v16 = vpop.f32.mrf.mxu2  ;;  %v607_v19 = vadd.f32 %v602_v14, %v550_v17 }
 0x15c   : > { %v606_v18 = vadd.f32 %v589_v16, %v549_v15 }
 0x15e   : > { %v646_v20 = vpop.f32.mrf.mxu0 }
 0x15f   : > { %v663_v22 = vadd.f32 %v646_v20, %v606_v18  ;;  %v659_v23 = vpop.f32.mrf.mxu1 }
 0x160   : > { %v664_v24 = vadd.f32 %v659_v23, %v607_v19 }
 0x161   : > { %v671_v25 = vadd.f32 %v669_v21, %v663_v22 }
 0x162   : > { %v672_v26 = vadd.f32 %v669_v21, %v664_v24  ;;  %v604_v27 = vpop.f32.mrf.mxu3 }
 0x163   : > { %v823_v28 = vmul.f32 -1.442695, %v671_v25  ;;  %v591_v29 = vpop.f32.mrf.mxu2 }
 0x164   : > { %v824_v30 = vmul.f32 -1.442695, %v672_v26 }
 0x165   : > { %881 = vpow2.f32 %v823_v28 }
 0x166   : > { %883 = vpow2.f32 %v824_v30  ;;  %v648_v31 = vpop.f32.mrf.mxu0 }
 0x167   : > { %v661_v32 = vpop.f32.mrf.mxu1 }
 0x16b   : > { %v882_v33 = vpop.eup %881 }
 0x16c   : > { %v884_v34 = vpop.eup %883  ;;  %v679_v35 = vadd.f32 1.0, %v882_v33 }
 0x16d   : > { %v680_v36 = vadd.f32 1.0, %v884_v34 }
 0x16e   : > { %885 = vrcp.f32 %v679_v35  ;;  %v692_v42 = vand.u32 2147483648, %v679_v35  ;;  %v690_v45 = vand.u32 2147483647, %v679_v35  ;;  %vm686_vm12 = vweird.f32 %v679_v35 }
 0x16f   : > { %887 = vrcp.f32 %v680_v36  ;;  %v707_v46 = vand.u32 2147483648, %v680_v36  ;;  %v705_v48 = vand.u32 2147483647, %v680_v36  ;;  %vm701_vm14 = vweird.f32 %v680_v36 }
 0x170   : > { %v693_v50 = vor.u32 1.1754944e-38, %v692_v42  ;;  %vm691_vm15 = vcmp.eq.f32.partialorder %v690_v45, 8.507059e+37 }
 0x171   : > { %v708_v53 = vor.u32 1.1754944e-38, %v707_v46  ;;  %vm706_vm1 = vcmp.eq.f32.partialorder %v705_v48, 8.507059e+37 }
 0x174   : > { %v886_v37 = vpop.eup %885 }
 0x175   : > { %v888_v38 = vpop.eup %887  ;;  %v682_v39 = vmul.f32 %v886_v37, %v679_v35  ;;  %vm687_vm10 = vweird.f32 %v886_v37 }
 0x176   : > { %v697_v40 = vmul.f32 %v888_v38, %v680_v36  ;;  %vm702_vm11 = vweird.f32 %v888_v38  ;;  %vm688_vm13 = vmor %vm686_vm12, %vm687_vm10 }
 0x177   : > { %v683_v41 = vsub.f32 1.0, %v682_v39  ;;  %vm703_vm0 = vmor %vm701_vm14, %vm702_vm11 }
 0x178   : > { %v698_v43 = vsub.f32 1.0, %v697_v40 }
 0x179   : > { %v684_v44 = vmul.f32 %v886_v37, %v683_v41 }
 0x17a   : > { %v699_v47 = vmul.f32 %v888_v38, %v698_v43 }
 0x17b   : > { %v685_v49 = vadd.f32 %v886_v37, %v684_v44 }
 0x17c   : > { %v700_v51 = vadd.f32 %v888_v38, %v699_v47 }
 0x17d   : > { %v689_v52 = vsel %vm688_vm13, %v886_v37, %v685_v49 }
 0x17e   : > { %v694_v54 = vsel %vm691_vm15, %v693_v50, %v689_v52  ;;  %v704_v55 = vsel %vm703_vm0, %v888_v38, %v700_v51 }
 0x17f   : > { %v709_v56 = vsel %vm706_vm1, %v708_v53, %v704_v55  ;;  %v711_v57 = vmul.f32 %v694_v54, %v671_v25 }
 0x180   : > { %v712_v58 = vmul.f32 %v709_v56, %v672_v26 }
 0x181   : > { %713 = vst [vmem:[%s163_s16] sm:$0xff] %v711_v57 }
 0x182   : > { %714 = vst [vmem:[%s163_s16 + $0x8] sm:$0xff] %v712_v58 }
 0x183   : > { %916 = shalt.err (!%p913_p3)
}
 0x184   : > { %832 = dma.vmem_to_hbm [thread:$0]  (%p1020_p5), %s730_s27, 256, %s732_s28, %s716_s29  }
 0x185 PF: > { %p838_p4 = scmp.ge.s32.totalorder %s951_s15, 2  ;;  %s743_s10 = sand.u32 1, %s939_s12  }
 0x186   : > { %s744_s11 = scalar_lea.sflag [#allocation3], %s743_s10 }
 0x187   : > { %p835_p7 = pnand %p838_p4, %p1024_p6 }
 0x189   : > { %p836_p8 = pneg %p835_p7 }
 0x18b   : > { %934 = dma.done.wait (%p836_p8), %s744_s11, 256  }
 0x18c   : > { %936 = vsyncadd (%p836_p8), %s744_s11, 4294967040  ;;  %p13_p9 = scmp.ge.s32.totalorder %s1007_s18, 4   ;;  %s1162_s12 = smov %s943_s13 }
 0x18d   : > { %s1163_s13 = smov %s947_s14  ;;  %s1164_s14 = smov %s1018_s21 }
 0x18e   : > { %s1165_s15 = smov %s1007_s18  ;;  %15 = sbr.rel (!%p13_p9) target bundleno = 3 (0x3), region = 75 }
 0x193   :  { %750 = vsyncpa [#allocation3], 1 }
 0x194   :  { %752 = vsyncpa [#allocation3 + $0x1], 1 }

</bundles_post_ra>
